<compile_context>
chip_gen: v7x
topology: tpu7x:2x2x1
jax: 0.10.0
libtpu: 0.0.40
codegen_flags: <defaults>
</compile_context>

<pallas_src>
import jax
import jax.numpy as jnp
from jax.experimental import pallas as pl
from jax.experimental.pallas import tpu as pltpu

LANE = 128


def _round_up(x, m):
    return (x + m - 1) // m * m


def _pick_tile(total, target):
    """Largest multiple of LANE <= target that divides `total` (a LANE multiple)."""
    t = max(LANE, min(total, (target // LANE) * LANE))
    while total % t:
        t -= LANE
    return t


def _caae_decoder_kernel(z_ref, cond_ref, embw1_ref, w1_ref, w2_ref, b2_ref,
                         w3_ref, b3_ref, out_ref, h2_ref):
    # z:     (TB, Lp)  bf16        cond: (TB, 1) int32
    # embw1: (Np, Hp)  bf16  = E @ W1_cond^T + b1   (VMEM-resident, Buffered(1))
    # w1:    (Lp, Hp)  bf16        w2: (Hp, Hp) bf16 (VMEM-resident)
    # b2:    (1, Hp)   f32
    # w3:    (Hp, TN)  bf16 slab   b3: (1, TN) f32   (streamed over j)
    # out:   (TB, TN)  bf16        h2_ref: (TB, Hp) bf16 scratch
    j = pl.program_id(1)

    @pl.when(j == 0)
    def _():
        tb = z_ref.shape[0]
        n_lab = embw1_ref.shape[0]
        # Fused embedding lookup: one-hot(condition) @ (E @ W1_cond^T + b1);
        # exact row selection on the MXU (b1 folded into the table).
        lab_iota = jax.lax.broadcasted_iota(jnp.int32, (tb, n_lab), 1)
        onehot = (cond_ref[...] == lab_iota).astype(jnp.bfloat16)

        # layer 1: tanh(z @ W1_z + onehot @ embw1); dropout = eval identity
        h1 = jnp.dot(z_ref[...], w1_ref[...],
                     preferred_element_type=jnp.float32)
        h1 += jnp.dot(onehot, embw1_ref[...],
                      preferred_element_type=jnp.float32)
        h1 = jnp.tanh(h1)

        # layer 2: ELU(h1 @ W2 + b2), alpha = 1 (clamped exp arg, no inf lanes)
        h2 = jnp.dot(h1.astype(jnp.bfloat16), w2_ref[...],
                     preferred_element_type=jnp.float32) + b2_ref[...]
        h2 = jnp.where(h2 > 0, h2, jnp.exp(jnp.minimum(h2, 0.0)) - 1.0)
        h2_ref[...] = h2.astype(jnp.bfloat16)

    # layer 3 (per output slab j): sigmoid(h2 @ W3_j + b3_j)
    o = jnp.dot(h2_ref[...], w3_ref[...],
                preferred_element_type=jnp.float32) + b3_ref[...]
    # sigmoid(x) == 0.5 * tanh(0.5 * x) + 0.5  -> one EUP op per element
    out_ref[...] = (0.5 * jnp.tanh(0.5 * o) + 0.5).astype(out_ref.dtype)


def caae_decoder_forward(z, condition, params, img_size, *,
                         tb_target=256, tn_target=2048):
    """z: (B, latent_dim) f32, condition: (B,) int32 labels."""
    emb = params["condition_emb"]              # (n_labels, cond_dim)
    w1, b1 = params["w1"], params["b1"]        # (hidden, latent+cond), (hidden,)
    w2, b2 = params["w2"], params["b2"]        # (hidden, hidden),      (hidden,)
    w3, b3 = params["w3"], params["b3"]        # (out_dim, hidden),     (out_dim,)

    B, latent = z.shape
    n_labels = emb.shape[0]
    hidden = w1.shape[0]
    out_dim = w3.shape[0]

    # Lane-width padding for all feature dims (sliced back after the call).
    Lp = _round_up(latent, LANE)
    Hp = _round_up(hidden, LANE)
    Op = _round_up(out_dim, LANE)
    Np = _round_up(n_labels, LANE)

    # Batch tile: >= 2 grid steps when possible (v7x dual TC), multiple of 16
    # (bf16 native (16,128) sublane packing).
    TB = min(tb_target, _round_up(max(-(-B // 2), 1), 16))
    Bp = _round_up(B, TB)
    # Output-column slab: largest multiple of 128 <= tn_target dividing Op.
    TN = _pick_tile(Op, tn_target)

    def pad2(a, r, c):
        return jnp.pad(a, ((0, r - a.shape[0]), (0, c - a.shape[1])))

    # Pre-transpose to (K, N); split W1 into z / condition parts; pre-project
    # the embedding table through the condition part and fold in b1 (exact
    # under the in-kernel one-hot row selection).
    w1_z = w1[:, :latent].T                    # (latent, hidden)
    w1_c = w1[:, latent:].T                    # (cond_dim, hidden)
    embw1 = emb @ w1_c + b1[None, :]           # (n_labels, hidden)

    w1_p = pad2(w1_z, Lp, Hp).astype(jnp.bfloat16)
    e1_p = pad2(embw1, Np, Hp).astype(jnp.bfloat16)
    w2_p = pad2(w2.T, Hp, Hp).astype(jnp.bfloat16)
    w3_p = pad2(w3.T, Hp, Op).astype(jnp.bfloat16)
    b2_p = pad2(b2.reshape(1, -1), 1, Hp).astype(jnp.float32)
    b3_p = pad2(b3.reshape(1, -1), 1, Op).astype(jnp.float32)

    z_p = pad2(z, Bp, Lp).astype(jnp.bfloat16)
    cond_p = jnp.pad(condition.astype(jnp.int32), (0, Bp - B)).reshape(Bp, 1)

    # Explicit scoped-VMEM budget: single-buffered resident weights, double-
    # buffered streamed slabs / activations, bf16 scratch, f32 temporaries.
    BF16, F32, I32 = 2, 4, 4
    resident = (Np * Hp + Lp * Hp + Hp * Hp) * BF16 + Hp * F32
    streamed = 2 * (Hp * TN * BF16 + TN * F32)
    acts = 2 * (TB * Lp * BF16 + TB * I32 + TB * TN * BF16)
    scratch = TB * Hp * BF16
    temps = 4 * TB * Hp * F32
    vmem_limit = int(1.25 * (resident + streamed + acts + scratch + temps))
    vmem_limit = min(max(vmem_limit + (2 << 20), 4 << 20), 100 << 20)

    batch_tiled = lambda i, j: (i, 0)
    col_slab = lambda i, j: (0, j)

    def resident_spec(shape):
        # Grid-invariant operand: stays in VMEM, single buffer (no wasted copy).
        return pl.BlockSpec(shape, lambda i, j: (0, 0),
                            pipeline_mode=pl.Buffered(1))

    out = pl.pallas_call(
        _caae_decoder_kernel,
        out_shape=jax.ShapeDtypeStruct((Bp, Op), jnp.bfloat16),
        grid_spec=pltpu.PrefetchScalarGridSpec(
            num_scalar_prefetch=0,
            grid=(Bp // TB, Op // TN),
            in_specs=[
                pl.BlockSpec((TB, Lp), batch_tiled),   # z
                pl.BlockSpec((TB, 1), batch_tiled),    # condition ids
                resident_spec((Np, Hp)),               # E @ W1_cond^T + b1
                resident_spec((Lp, Hp)),               # W1_z
                resident_spec((Hp, Hp)),               # W2
                resident_spec((1, Hp)),                # b2
                pl.BlockSpec((Hp, TN), col_slab),      # W3 slab (streamed)
                pl.BlockSpec((1, TN), col_slab),       # b3 slab
            ],
            out_specs=pl.BlockSpec((TB, TN), lambda i, j: (i, j)),
            scratch_shapes=[pltpu.VMEM((TB, Hp), jnp.bfloat16)],
        ),
        compiler_params=pltpu.CompilerParams(
            dimension_semantics=("parallel", "arbitrary"),
            vmem_limit_bytes=vmem_limit),
    )(z_p, cond_p, e1_p, w1_p, w2_p, b2_p, w3_p, b3_p)

    # Slice off padding, back to f32, reshape to NCHW like x_hat.reshape(...).
    return out[:B, :out_dim].astype(jnp.float32).reshape(
        -1, 1, img_size, img_size)


def init_params(key, cond_emb_dim, latent_dim, hidden_dim, out_dim,
                n_condition_labels):
    ks = jax.random.split(key, 7)
    in_dim = latent_dim + cond_emb_dim

    def lin_init(kw, kb, fan_in, shape_w, shape_b):
        bound = 1.0 / jnp.sqrt(fan_in)
        w = jax.random.uniform(kw, shape_w, jnp.float32, -bound, bound)
        b = jax.random.uniform(kb, shape_b, jnp.float32, -bound, bound)
        return w, b

    emb = jax.random.normal(ks[0], (n_condition_labels, cond_emb_dim),
                            jnp.float32)
    w1, b1 = lin_init(ks[1], ks[2], in_dim, (hidden_dim, in_dim), (hidden_dim,))
    w2, b2 = lin_init(ks[3], ks[4], hidden_dim, (hidden_dim, hidden_dim),
                      (hidden_dim,))
    w3, b3 = lin_init(ks[5], ks[6], hidden_dim, (out_dim, hidden_dim),
                      (out_dim,))
    return {"condition_emb": emb, "w1": w1, "b1": b1,
            "w2": w2, "b2": b2, "w3": w3, "b3": b3}


if __name__ == "__main__":
    # Small shapes consistent with the module (kernel is sized for much
    # larger hidden/out dims; at these sizes it is overhead dominated).
    cond_emb_dim = 8
    latent_dim = 16
    hidden_dim = 64
    img_size = 16
    out_dim = img_size * img_size          # 256
    n_condition_labels = 10
    batch = 40

    key = jax.random.PRNGKey(0)
    kp, kz, kc = jax.random.split(key, 3)

    params = init_params(kp, cond_emb_dim, latent_dim, hidden_dim, out_dim,
                         n_condition_labels)
    z = jax.random.normal(kz, (batch, latent_dim), jnp.float32)
    condition = jax.random.randint(kc, (batch,), 0, n_condition_labels,
                                   jnp.int32)

    # tn_target=128 forces 2 output slabs so the j>0 scratch-reuse path is
    # exercised even at this toy out_dim; grid ends up (2, 2).
    x_hat = caae_decoder_forward(z, condition, params, img_size,
                                 tn_target=128)
    x_hat = jax.block_until_ready(x_hat)
    assert x_hat.shape == (batch, 1, img_size, img_size)

    # Reference in plain f32 JAX (eval-mode dropout = identity).  Tolerance
    # loosened for intentional bf16 MXU operands + bf16 output.
    cond_emb = jnp.take(params["condition_emb"], condition, axis=0)
    z_c = jnp.concatenate([z, cond_emb], axis=-1)
    h1 = jnp.tanh(z_c @ params["w1"].T + params["b1"])
    h2p = h1 @ params["w2"].T + params["b2"]
    h2 = jnp.where(h2p > 0, h2p, jnp.exp(jnp.minimum(h2p, 0.0)) - 1.0)
    ref = jax.nn.sigmoid(h2 @ params["w3"].T + params["b3"]).reshape(
        -1, 1, img_size, img_size)
    err = float(jnp.max(jnp.abs(x_hat - ref)))
    assert err < 3e-2, err

    print("KERNEL_OK")
</pallas_src>

<mosaic_0001>
module attributes {stable_mosaic.version = 11 : i64} {
  func.func @_caae_decoder_kernel(%arg0: i32, %arg1: i32, %arg2: memref<32x128xbf16, #tpu.memory_space<vmem>>, %arg3: memref<32x1xi32, #tpu.memory_space<vmem>>, %arg4: memref<128x128xbf16, #tpu.memory_space<vmem>>, %arg5: memref<128x128xbf16, #tpu.memory_space<vmem>>, %arg6: memref<128x128xbf16, #tpu.memory_space<vmem>>, %arg7: memref<1x128xf32, #tpu.memory_space<vmem>>, %arg8: memref<128x128xbf16, #tpu.memory_space<vmem>>, %arg9: memref<1x128xf32, #tpu.memory_space<vmem>>, %arg10: memref<32x128xbf16, #tpu.memory_space<vmem>>, %arg11: memref<32x128xbf16, #tpu.memory_space<vmem>>) attributes {dimension_semantics = [#tpu.dimension_semantics<parallel>, #tpu.dimension_semantics<arbitrary>], iteration_bounds = array<i64: 2, 2>, scalar_prefetch = 0 : i64, scratch_operands = 1 : i64, tpu.core_type = #tpu.core_type<tc>, window_params = [{transform_indices = @transform_0, window_bounds = array<i64: 32, 128>}, {transform_indices = @transform_1, window_bounds = array<i64: 32, 1>}, {pipeline_mode = #tpu.pipeline_mode<synchronous>, transform_indices = @transform_2, window_bounds = array<i64: 128, 128>}, {pipeline_mode = #tpu.pipeline_mode<synchronous>, transform_indices = @transform_3, window_bounds = array<i64: 128, 128>}, {pipeline_mode = #tpu.pipeline_mode<synchronous>, transform_indices = @transform_4, window_bounds = array<i64: 128, 128>}, {pipeline_mode = #tpu.pipeline_mode<synchronous>, transform_indices = @transform_5, window_bounds = array<i64: 1, 128>}, {transform_indices = @transform_6, window_bounds = array<i64: 128, 128>}, {transform_indices = @transform_7, window_bounds = array<i64: 1, 128>}, {transform_indices = @transform_8, window_bounds = array<i64: 32, 128>}]} {
    %c0_i32 = arith.constant 0 : i32
    %0 = arith.cmpi eq, %arg1, %c0_i32 : i32
    %1 = arith.extui %0 : i1 to i32
    %c0_i32_0 = arith.constant 0 : i32
    %2 = arith.cmpi ne, %1, %c0_i32_0 : i32
    scf.if %2 {
      %18 = tpu.iota {dimensions = array<i32: 1>} : vector<32x128xi32>
      %c0_11 = arith.constant 0 : index
      %c0_12 = arith.constant 0 : index
      %19 = vector.load %arg3[%c0_11, %c0_12] : memref<32x1xi32, #tpu.memory_space<vmem>>, vector<32x1xi32>
      %20 = vector.broadcast %19 : vector<32x1xi32> to vector<32x128xi32>
      %21 = arith.cmpi eq, %20, %18 : vector<32x128xi32>
      %22 = arith.extui %21 : vector<32x128xi1> to vector<32x128xi32>
      %23 = arith.sitofp %22 : vector<32x128xi32> to vector<32x128xf32>
      %24 = arith.truncf %23 : vector<32x128xf32> to vector<32x128xbf16>
      %c0_13 = arith.constant 0 : index
      %c0_14 = arith.constant 0 : index
      %25 = vector.load %arg2[%c0_13, %c0_14] : memref<32x128xbf16, #tpu.memory_space<vmem>>, vector<32x128xbf16>
      %c0_15 = arith.constant 0 : index
      %c0_16 = arith.constant 0 : index
      %26 = vector.load %arg5[%c0_15, %c0_16] : memref<128x128xbf16, #tpu.memory_space<vmem>>, vector<128x128xbf16>
      %cst_17 = arith.constant dense<0.000000e+00> : vector<32x128xf32>
      %27 = tpu.matmul %25, %26, %cst_17 {dimension_numbers = #tpu.dot_dimension_numbers<[1], [0], [0], [1], [0, 0, 1, 1], [], []>} : vector<32x128xbf16>, vector<128x128xbf16>, vector<32x128xf32> -> vector<32x128xf32>
      %c0_18 = arith.constant 0 : index
      %c0_19 = arith.constant 0 : index
      %28 = vector.load %arg4[%c0_18, %c0_19] : memref<128x128xbf16, #tpu.memory_space<vmem>>, vector<128x128xbf16>
      %cst_20 = arith.constant dense<0.000000e+00> : vector<32x128xf32>
      %29 = tpu.matmul %24, %28, %cst_20 {dimension_numbers = #tpu.dot_dimension_numbers<[1], [0], [0], [1], [0, 0, 1, 1], [], []>} : vector<32x128xbf16>, vector<128x128xbf16>, vector<32x128xf32> -> vector<32x128xf32>
      %30 = arith.addf %27, %29 : vector<32x128xf32>
      %31 = math.tanh %30 : vector<32x128xf32>
      %32 = arith.truncf %31 : vector<32x128xf32> to vector<32x128xbf16>
      %c0_21 = arith.constant 0 : index
      %c0_22 = arith.constant 0 : index
      %33 = vector.load %arg6[%c0_21, %c0_22] : memref<128x128xbf16, #tpu.memory_space<vmem>>, vector<128x128xbf16>
      %cst_23 = arith.constant dense<0.000000e+00> : vector<32x128xf32>
      %34 = tpu.matmul %32, %33, %cst_23 {dimension_numbers = #tpu.dot_dimension_numbers<[1], [0], [0], [1], [0, 0, 1, 1], [], []>} : vector<32x128xbf16>, vector<128x128xbf16>, vector<32x128xf32> -> vector<32x128xf32>
      %c0_24 = arith.constant 0 : index
      %c0_25 = arith.constant 0 : index
      %35 = vector.load %arg7[%c0_24, %c0_25] : memref<1x128xf32, #tpu.memory_space<vmem>>, vector<1x128xf32>
      %36 = vector.broadcast %35 : vector<1x128xf32> to vector<32x128xf32>
      %37 = arith.addf %34, %36 : vector<32x128xf32>
      %cst_26 = arith.constant 0.000000e+00 : f32
      %38 = vector.broadcast %cst_26 : f32 to vector<32x128xf32>
      %39 = arith.cmpf ogt, %37, %38 : vector<32x128xf32>
      %cst_27 = arith.constant 0.000000e+00 : f32
      %40 = vector.broadcast %cst_27 : f32 to vector<32x128xf32>
      %41 = arith.minimumf %37, %40 : vector<32x128xf32>
      %42 = math.exp %41 : vector<32x128xf32>
      %cst_28 = arith.constant 1.000000e+00 : f32
      %43 = vector.broadcast %cst_28 : f32 to vector<32x128xf32>
      %44 = arith.subf %42, %43 : vector<32x128xf32>
      %45 = arith.select %39, %37, %44 : vector<32x128xi1>, vector<32x128xf32>
      %46 = arith.truncf %45 : vector<32x128xf32> to vector<32x128xbf16>
      %c0_29 = arith.constant 0 : index
      %c0_30 = arith.constant 0 : index
      %47 = vector.load %arg11[%c0_29, %c0_30] : memref<32x128xbf16, #tpu.memory_space<vmem>>, vector<32x128xbf16>
      tpu.vector_store %arg11[%c0_29, %c0_30], %46 {strides = array<i32>} : memref<32x128xbf16, #tpu.memory_space<vmem>>, vector<32x128xbf16>,
    } else {
    }
    %c0 = arith.constant 0 : index
    %c0_1 = arith.constant 0 : index
    %3 = vector.load %arg11[%c0, %c0_1] : memref<32x128xbf16, #tpu.memory_space<vmem>>, vector<32x128xbf16>
    %c0_2 = arith.constant 0 : index
    %c0_3 = arith.constant 0 : index
    %4 = vector.load %arg8[%c0_2, %c0_3] : memref<128x128xbf16, #tpu.memory_space<vmem>>, vector<128x128xbf16>
    %cst = arith.constant dense<0.000000e+00> : vector<32x128xf32>
    %5 = tpu.matmul %3, %4, %cst {dimension_numbers = #tpu.dot_dimension_numbers<[1], [0], [0], [1], [0, 0, 1, 1], [], []>} : vector<32x128xbf16>, vector<128x128xbf16>, vector<32x128xf32> -> vector<32x128xf32>
    %c0_4 = arith.constant 0 : index
    %c0_5 = arith.constant 0 : index
    %6 = vector.load %arg9[%c0_4, %c0_5] : memref<1x128xf32, #tpu.memory_space<vmem>>, vector<1x128xf32>
    %7 = vector.broadcast %6 : vector<1x128xf32> to vector<32x128xf32>
    %8 = arith.addf %5, %7 : vector<32x128xf32>
    %cst_6 = arith.constant 5.000000e-01 : f32
    %9 = vector.broadcast %cst_6 : f32 to vector<32x128xf32>
    %10 = arith.mulf %9, %8 : vector<32x128xf32>
    %11 = math.tanh %10 : vector<32x128xf32>
    %cst_7 = arith.constant 5.000000e-01 : f32
    %12 = vector.broadcast %cst_7 : f32 to vector<32x128xf32>
    %13 = arith.mulf %12, %11 : vector<32x128xf32>
    %cst_8 = arith.constant 5.000000e-01 : f32
    %14 = vector.broadcast %cst_8 : f32 to vector<32x128xf32>
    %15 = arith.addf %13, %14 : vector<32x128xf32>
    %16 = arith.truncf %15 : vector<32x128xf32> to vector<32x128xbf16>
    %c0_9 = arith.constant 0 : index
    %c0_10 = arith.constant 0 : index
    %17 = vector.load %arg10[%c0_9, %c0_10] : memref<32x128xbf16, #tpu.memory_space<vmem>>, vector<32x128xbf16>
    tpu.vector_store %arg10[%c0_9, %c0_10], %16 {strides = array<i32>} : memref<32x128xbf16, #tpu.memory_space<vmem>>, vector<32x128xbf16>,
    return
  }
  func.func @transform_0(%arg0: i32, %arg1: i32) -> (i32, i32) {
    %c0_i32 = arith.constant 0 : i32
    %c0_i32_0 = arith.constant 0 : i32
    return %arg0, %c0_i32 : i32, i32
  }
  func.func @transform_1(%arg0: i32, %arg1: i32) -> (i32, i32) {
    %c0_i32 = arith.constant 0 : i32
    %c0_i32_0 = arith.constant 0 : i32
    return %arg0, %c0_i32 : i32, i32
  }
  func.func @transform_2(%arg0: i32, %arg1: i32) -> (i32, i32) {
    %c0_i32 = arith.constant 0 : i32
    %c0_i32_0 = arith.constant 0 : i32
    %c0_i32_1 = arith.constant 0 : i32
    return %c0_i32, %c0_i32_0 : i32, i32
  }
  func.func @transform_3(%arg0: i32, %arg1: i32) -> (i32, i32) {
    %c0_i32 = arith.constant 0 : i32
    %c0_i32_0 = arith.constant 0 : i32
    %c0_i32_1 = arith.constant 0 : i32
    return %c0_i32, %c0_i32_0 : i32, i32
  }
  func.func @transform_4(%arg0: i32, %arg1: i32) -> (i32, i32) {
    %c0_i32 = arith.constant 0 : i32
    %c0_i32_0 = arith.constant 0 : i32
    %c0_i32_1 = arith.constant 0 : i32
    return %c0_i32, %c0_i32_0 : i32, i32
  }
  func.func @transform_5(%arg0: i32, %arg1: i32) -> (i32, i32) {
    %c0_i32 = arith.constant 0 : i32
    %c0_i32_0 = arith.constant 0 : i32
    %c0_i32_1 = arith.constant 0 : i32
    return %c0_i32, %c0_i32_0 : i32, i32
  }
  func.func @transform_6(%arg0: i32, %arg1: i32) -> (i32, i32) {
    %c0_i32 = arith.constant 0 : i32
    %c0_i32_0 = arith.constant 0 : i32
    return %c0_i32, %arg1 : i32, i32
  }
  func.func @transform_7(%arg0: i32, %arg1: i32) -> (i32, i32) {
    %c0_i32 = arith.constant 0 : i32
    %c0_i32_0 = arith.constant 0 : i32
    return %c0_i32, %arg1 : i32, i32
  }
  func.func @transform_8(%arg0: i32, %arg1: i32) -> (i32, i32) {
    %c0_i32 = arith.constant 0 : i32
    return %arg0, %arg1 : i32, i32
  }
}

</mosaic_0001>

<bundles_post_ra>
// kernel: tpu_custom_call.1
= control target key start
LH: loop header
LB: loop body
LE: loop exit
PB: predicated region body
PF: predicated region fallthrough
CT: control target
= control target key end

     0   :  { %s2443_s0 = inlined_call_operand.hbm [shape: bf16[64,128], index: 0, kind: input, shape index: {}]   ;;  %s2444_s1 = inlined_call_operand.vmem [shape: s32[64,1], index: 1, kind: input, shape index: {}]   ;;  %s2445_s2 = inlined_call_operand.vmem [shape: bf16[128,128], index: 2, kind: input, shape index: {}]   ;;  %s2446_s3 = inlined_call_operand.hbm [shape: bf16[128,128], index: 3, kind: input, shape index: {}]   ;;  %s2447_s4 = inlined_call_operand.hbm [shape: bf16[128,128], index: 4, kind: input, shape index: {}]   ;;  %s2448_s5 = inlined_call_operand.vmem [shape: f32[1,128], index: 5, kind: input, shape index: {}]   ;;  %s2449_s6 = inlined_call_operand.hbm [shape: bf16[128,256], index: 6, kind: input, shape index: {}]   ;;  %s2450_s7 = inlined_call_operand.vmem [shape: f32[1,256], index: 7, kind: input, shape index: {}]   ;;  %s2451_s8 = inlined_call_operand.hbm [shape: bf16[64,256], index: 8, kind: output, shape index: {}]  }
   0x1   :  { %2471 = sst [smem:[#allocation24_spill]] %s2443_s0 }
   0x2   :  { %2472 = sst [smem:[#allocation25_spill]] %s2444_s1 }
   0x3   :  { %2473 = sst [smem:[#allocation26_spill]] %s2445_s2 }
   0x4   :  { %2474 = sst [smem:[#allocation27_spill]] %s2446_s3 }
   0x5   :  { %2475 = sst [smem:[#allocation28_spill]] %s2447_s4 }
   0x6   :  { %2476 = sst [smem:[#allocation29_spill]] %s2448_s5 }
   0x7   :  { %2477 = sst [smem:[#allocation30_spill]] %s2450_s7 }
   0x8   :  { %2478 = sst [smem:[#allocation31_spill]] %s2451_s8 }
   0x9   :  { %13 = vsyncpa [#allocation4], 0 }
   0xa   :  { %15 = vsyncpa [#allocation4 + $0x1], 0 }
   0xb   :  { %16 = vsyncpa [#allocation7], 0 }
   0xc   :  { %17 = vsyncpa [#allocation10], 0 }
   0xd   :  { %19 = vsyncpa [#allocation10 + $0x1], 0 }
   0xe   :  { %20 = vsyncpa [#allocation5], 0 }
   0xf   :  { %22 = vsyncpa [#allocation5 + $0x1], 0  ;;  %s1969_s27 = smov 0   ;;  %s1971_s28 = smov 0  }
  0x10   :  { %s1973_s29 = smov 0   ;;  %s1975_s30 = smov 0  }
  0x11   :  { %s1977_s9 = smov 0   ;;  %s1979_s10 = smov 0  }
  0x12   :  { %s1981_s11 = smov 0   ;;  %s1983_s12 = smov 0  }
  0x13   :  { %s1985_s13 = smov 0   ;;  %s1987_s14 = smov 0  }
  0x14   :  { %s1989_s15 = smov 0   ;;  %s1991_s16 = smov 0  }
  0x15   :  { %s1993_s17 = smov 0   ;;  %s1995_s18 = smov 0  }
  0x16 LB: > { %2479 = sst [smem:[#allocation16_spill]] %s1857_s27  ;;  %s1200_s19 = sadd.s32 4294967295, %s1909_s18   ;;  %s1909_s18 = sphi %s1995_s18, %s28_s18   ;;  %s1905_s17 = sphi %s1993_s17, %s2540_s17   ;;  %s1901_s16 = sphi %s1991_s16, %s2539_s16   ;;  %s1897_s15 = sphi %s1989_s15, %s2538_s15   ;;  %s1893_s14 = sphi %s1987_s14, %s2527_s14   ;;  %s1889_s13 = sphi %s1985_s13, %s2537_s13   ;;  %s1885_s12 = sphi %s1983_s12, %s2536_s12   ;;  %s1881_s11 = sphi %s1981_s11, %s2535_s11   ;;  %s1877_s10 = sphi %s1979_s10, %s2534_s10   ;;  %s1873_s9 = sphi %s1977_s9, %s2533_s9   ;;  %s1869_s30 = sphi %s1975_s30, %s2532_s30   ;;  %s1865_s29 = sphi %s1973_s29, %s2531_s29   ;;  %s1861_s28 = sphi %s1971_s28, %s2530_s28   ;;  %s1857_s27 = sphi %s1969_s27, %s2529_s27  }
  0x17   : > { %2480 = sst [smem:[#allocation17_spill]] %s1893_s14  ;;  %s1201_s20 = sadd.s32 4294967294, %s1909_s18  }
  0x18   : > { %2481 = sst [smem:[#allocation18_spill]] %s1897_s15  ;;  %p60_p0 = scmp.ne.s32.totalorder %s1885_s12, %s1881_s11 }
  0x19   : > { %2482 = sst [smem:[#allocation19_spill]] %s1901_s16  ;;  %p2038_p1 = scmp.eq.s32.totalorder %s1200_s19, 0 }
  0x1a   : > { %p196_p2 = scmp.ne.s32.totalorder %s1873_s9, %s1869_s30  ;;  %p247_p3 = scmp.ne.s32.totalorder %s1865_s29, %s1861_s28 }
  0x1b   : > { %s2483_s21 = scalar_select %p2038_p1, 1, 0 }
  0x1c   : > { %p2047_p4 = por %p2038_p1, %p60_p0  ;;  %p248_p5 = scmp.eq.s32.totalorder %s1200_s19, 3 }
  0x1d   : > { %p2053_p6 = por %p196_p2, %p2038_p1  ;;  %p253_p7 = scmp.ne.s32.totalorder %s1861_s28, %s1857_s27 }
  0x1e   : > { %s2484_s22 = scalar_select %p2047_p4, 1, 0 }
  0x1f   : > { %s2485_s23 = scalar_select %p2053_p6, 1, 0 }
  0x20   : > { %p2059_p8 = por %p248_p5, %p247_p3  ;;  %p254_p9 = scmp.eq.s32.totalorder %s1201_s20, 3 }
  0x21   : > { %p1202_p10 = scmp.ge.s32.totalorder %s1909_s18, 1  ;;  %p261_p11 = scmp.lt.s32.totalorder %s1909_s18, 5 }
  0x22   : > { %s2486_s24 = scalar_select %p2059_p8, 1, 0 }
  0x23   : > { %p2065_p12 = por %p254_p9, %p253_p7  ;;  %p2069_p13 = pnand %p1202_p10, %p261_p11 }
  0x24   : > { %2487 = sst [smem:[#allocation20_spill]] %s2486_s24  ;;  %s1911_s30 = smov [#allocation6]  }
  0x25   : > { %s2488_s25 = scalar_select %p2065_p12, 1, 0 }
  0x26   : > { %s2490_s26 = scalar_select %p2069_p13, 1, 0 }
  0x27   : > { %2489 = sst [smem:[#allocation21_spill]] %s2488_s25  ;;  %s276_s11 = sshll.u32 %s1911_s30, 4  ;;  %s277_s11 = int_to_ptr.vmem [resolvable:$true] %s276_s11 }
  0x28   : > { %p1433_p0 = pneg %p2069_p13  ;;  %s1912_s20 = smov [#allocation8]  }
  0x29   : > { %s289_s27 = sshll.u32 %s1912_s20, 4  ;;  %s2492_s3 = sld [smem:[#allocation27_spill]]  ;;  %s2081_s27 = int_to_ptr.vmem [resolvable:$true] %s289_s27 }
  0x2a   : > { %p2077_p2 = pnand %p1433_p0, %p2038_p1 }
  0x2c   : > { %p1641_p5 = pneg %p2077_p2 }
  0x2f   : > { %s1639_s24 = scalar_lea.hbm %s2492_s3, 1024 }
  0x30   : > { %p1640_p3 = scmp.ne.s32.totalorder %s2492_s3, %s1639_s24  ;;  %p1646_p10 = scmp.lt.u32.totalorder %s1639_s24, %s2492_s3 }
  0x32   : > { %p1642_p7 = pnand %p1641_p5, %p1640_p3 }
  0x34   : > { %p1643_p9 = pneg %p1642_p7 }
  0x36   : > { %p1648_p11 = pnand %p1646_p10, %p1643_p9 }
  0x38   : > { %1651 = shalt.err (!%p1648_p11)
}
  0x39   : > { %s1652_s20 = scalar_lea.vmem %s277_s11, 1024  ;;  %p1660_p6 = scmp.lt.s32.totalorder %s277_s11, %s277_s11 }
  0x3a   : > { %p1653_p0 = scmp.ne.s32.totalorder %s277_s11, %s1652_s20  ;;  %p1661_p1 = scmp.lt.s32.totalorder %s1652_s20, %s1652_s20 }
  0x3c   : > { %p1655_p12 = pnand %p1653_p0, %p1641_p5  ;;  %p1662_p4 = por %p1661_p1, %p1660_p6 }
  0x3e   : > { %p1656_p8 = pneg %p1655_p12 }
  0x40   : > { %p1663_p13 = pnand %p1662_p4, %p1656_p8 }
  0x42   : > { %1666 = shalt.err (!%p1663_p13)
}
  0x43   : > { %s2465_s5 = smov 64   ;;  %s2468_s8 = smov 4  }
  0x44   : > { %1436 = dma.hbm_to_vmem [thread:$0]  (!%p2077_p2), %s2492_s3, 1024, %s277_s11, [#allocation7], %s2465_s5, %s2465_s5, %s2468_s8  }
  0x45   : > { %s2493_s4 = sld [smem:[#allocation28_spill]] }
  0x4b   : > { %s1667_s30 = scalar_lea.hbm %s2493_s4, 1024 }
  0x4c   : > { %p1668_p1 = scmp.ne.s32.totalorder %s2493_s4, %s1667_s30  ;;  %p1674_p8 = scmp.lt.u32.totalorder %s1667_s30, %s2493_s4 }
  0x4e   : > { %p1670_p4 = pnand %p1668_p1, %p1641_p5 }
  0x50   : > { %p1671_p6 = pneg %p1670_p4 }
  0x52   : > { %p1676_p12 = pnand %p1674_p8, %p1671_p6 }
  0x54   : > { %1679 = shalt.err (!%p1676_p12)
}
  0x55   : > { %s1680_s11 = scalar_lea.vmem %s2081_s27, 1024  ;;  %p1688_p9 = scmp.lt.s32.totalorder %s2081_s27, %s2081_s27 }
  0x56   : > { %p1681_p13 = scmp.ne.s32.totalorder %s2081_s27, %s1680_s11  ;;  %p1689_p10 = scmp.lt.s32.totalorder %s1680_s11, %s1680_s11 }
  0x58   : > { %p1683_p3 = pnand %p1681_p13, %p1641_p5  ;;  %p1690_p11 = por %p1689_p10, %p1688_p9 }
  0x5a   : > { %p1684_p7 = pneg %p1683_p3 }
  0x5c   : > { %p1691_p0 = pnand %p1690_p11, %p1684_p7 }
  0x5e   : > { %1694 = shalt.err (!%p1691_p0)
}
  0x5f   : > { %1439 = dma.hbm_to_vmem [thread:$0]  (!%p2077_p2), %s2493_s4, 1024, %s2081_s27, [#allocation7], %s2465_s5, %s2465_s5, %s2468_s8  }
  0x60   : > { %p54_p5 = scmp.ne.s32.totalorder %s1889_s13, %s1885_s12  ;;  %p55_p1 = scmp.eq.s32.totalorder %s1909_s18, 0 }
  0x61   : > { %p2467_p4 = scmp.lt.s32.totalorder %s1909_s18, 4  ;;  %s306_s2 = sand.u32 1, %s1889_s13  }
  0x62   : > { %s1278_s7 = sshll.u32 %s1905_s17, 8  ;;  %p56_p6 = por %p55_p1, %p54_p5 }
  0x63   : > { %s1206_s24 = sshll.u32 %s306_s2, 4  ;;  %s2494_s0 = sld [smem:[#allocation24_spill]] }
  0x64   : > { %p2153_p2 = pnand %p2467_p4, %p56_p6  ;;  %s310_s11 = scalar_lea.vmem [#allocation3], %s1206_s24 }
  0x65   : > { %s317_s1 = sshll.u32 %s310_s11, 4  ;;  %s2159_s14 = scalar_lea.sflag [#allocation4], %s306_s2  ;;  %s2157_s1 = int_to_ptr.vmem [resolvable:$true] %s317_s1 }
  0x66   : > { %p1697_p12 = pneg %p2153_p2 }
  0x69   : > { %s2149_s20 = scalar_lea.hbm %s2494_s0, %s1278_s7  ;;  %s1700_s15 = scalar_lea.hbm %s2494_s0, 512 }
  0x6a   : > { %s1695_s25 = scalar_lea.hbm %s2149_s20, 256  ;;  %p1701_p7 = scmp.lt.u32.totalorder %s2149_s20, %s2494_s0 }
  0x6b   : > { %p1696_p8 = scmp.ne.s32.totalorder %s2149_s20, %s1695_s25  ;;  %p1702_p9 = scmp.lt.u32.totalorder %s1700_s15, %s1695_s25 }
  0x6c   : > { %p1704_p11 = scmp.lt.u32.totalorder %s1695_s25, %s2149_s20 }
  0x6d   : > { %p1698_p13 = pnand %p1697_p12, %p1696_p8  ;;  %p1703_p10 = por %p1702_p9, %p1701_p7 }
  0x6f   : > { %p1699_p3 = pneg %p1698_p13  ;;  %p1705_p0 = por %p1704_p11, %p1703_p10 }
  0x71   : > { %p1706_p5 = pnand %p1705_p0, %p1699_p3 }
  0x73   : > { %1709 = shalt.err (!%p1706_p5)
}
  0x74   : > { %s1710_s2 = scalar_lea.vmem %s2157_s1, 256  ;;  %s1915_s24 = smov [#allocation3]  }
  0x75   : > { %p1711_p6 = scmp.ne.s32.totalorder %s2157_s1, %s1710_s2  ;;  %s1715_s11 = sshll.u32 %s1915_s24, 4  ;;  %s1716_s11 = int_to_ptr.vmem [resolvable:$false] %s1715_s11 }
  0x76   : > { %s1717_s5 = scalar_lea.vmem %s1716_s11, 512  ;;  %p1718_p4 = scmp.lt.s32.totalorder %s2157_s1, %s1716_s11 }
  0x77   : > { %p1713_p8 = pnand %p1711_p6, %p1697_p12  ;;  %p1719_p7 = scmp.lt.s32.totalorder %s1717_s5, %s1710_s2 }
  0x79   : > { %p1714_p13 = pneg %p1713_p8  ;;  %p1720_p9 = por %p1719_p7, %p1718_p4 }
  0x7b   : > { %p1721_p10 = pnand %p1720_p9, %p1714_p13 }
  0x7d   : > { %1724 = shalt.err (!%p1721_p10)
}
  0x7e   : > { %s2496_s15 = smov 64   ;;  %s183_s19 = sadd.s32 1, %s1877_s10 }
  0x7f   : > { %1443 = dma.hbm_to_vmem [thread:$0]  (!%p2153_p2), %s2149_s20, 256, %s2157_s1, %s2159_s14, %s2496_s15, %s2496_s15, %s2468_s8  }
  0x80   : > { %s37_s27 = sadd.s32 1, %s1901_s16  ;;  %p190_p4 = scmp.ne.s32.totalorder %s1877_s10, %s1873_s9 }
  0x81   : > { %p38_p12 = scmp.ge.s32.totalorder %s37_s27, 2  ;;  %s237_s25 = sadd.s32 1, %s1865_s29 }
  0x82   : > { %p2197_p3 = por %p190_p4, %p55_p1  ;;  %s336_s30 = sand.u32 1, %s1877_s10  }
  0x83   : > { %s2542_s27 = smov (%p38_p12, %s37_s27), 0  ;;  %s2499_s2 = sadd.s32 1, %s1905_s17 }
  0x84   : > { %2498 = sst [smem:[#allocation22_spill]] %s2542_s27  ;;  %s2544_s2 = smov (!%p38_p12, %s2499_s2), %s1905_s17 }
  0x85   : > { %s180_s20 = ssub.s32 %s1901_s16, %s2542_s27  ;;  %p42_p2 = scmp.ge.s32.totalorder %s2544_s2, 2 }
  0x86   : > { %p181_p11 = scmp.eq.s32.totalorder %s180_s20, 0  ;;  %s1209_s1 = sshll.u32 %s336_s30, 6 }
  0x87   : > { %s1210_s14 = sshll.u32 %s1901_s16, 6  ;;  %s2546_s2 = smov (%p42_p2, %s2544_s2), 0 }
  0x88   : > { %s2213_s24 = scalar_select %p181_p11, %s1877_s10, %s183_s19  }
  0x89   : > { %s44_s11 = ssub.s32 %s1905_s17, %s2546_s2  ;;  %s2220_s3 = scalar_lea.hbm %s2449_s6, %s1210_s14 }
  0x8a   : > { %2500 = sst [smem:[#allocation23_spill]] %s2213_s24  ;;  %p45_p1 = scmp.eq.s32.totalorder %s44_s11, 0 }
  0x8b   : > { %s234_s5 = sor.u32 %s180_s20, %s44_s11  ;;  %s2501_s4 = sadd.s32 1, %s1889_s13 }
  0x8c   : > { %p235_p0 = scmp.eq.s32.totalorder %s234_s5, 0  ;;  %s340_s19 = scalar_lea.vmem [#allocation9], %s1209_s1 }
  0x8d   : > { %s2225_s27 = scalar_select %p45_p1, %s1889_s13, %s2501_s4  }
  0x8e   : > { %s2228_s16 = scalar_select %p235_p0, %s1865_s29, %s237_s25  }
  0x8f   : > { %s346_s24 = sshll.u32 %s340_s19, 4  ;;  %p2502_p5 = scmp.lt.s32.totalorder %s1909_s18, 4  ;;  %s2238_s24 = int_to_ptr.vmem [resolvable:$true] %s346_s24 }
  0x90   : > { %s2240_s0 = scalar_lea.sflag [#allocation10], %s336_s30  ;;  %s1725_s8 = scalar_lea.hbm %s2220_s3, 1024 }
  0x91   : > { %p2234_p6 = pnand %p2502_p5, %p2197_p3  ;;  %p1726_p8 = scmp.ne.s32.totalorder %s2220_s3, %s1725_s8 }
  0x92   : > { %s1730_s7 = scalar_lea.hbm %s2449_s6, 2048  ;;  %p1731_p10 = scmp.lt.u32.totalorder %s2220_s3, %s2449_s6 }
  0x93   : > { %p1727_p13 = pneg %p2234_p6  ;;  %p1732_p4 = scmp.lt.u32.totalorder %s1730_s7, %s1725_s8 }
  0x94   : > { %p1734_p3 = scmp.lt.u32.totalorder %s1725_s8, %s2220_s3 }
  0x95   : > { %p1728_p7 = pnand %p1727_p13, %p1726_p8  ;;  %p1733_p12 = por %p1732_p4, %p1731_p10 }
  0x97   : > { %p1729_p9 = pneg %p1728_p7  ;;  %p1735_p2 = por %p1734_p3, %p1733_p12 }
  0x99   : > { %p1736_p11 = pnand %p1735_p2, %p1729_p9 }
  0x9b   : > { %1739 = shalt.err (!%p1736_p11)
}
  0x9c   : > { %s1740_s30 = scalar_lea.vmem %s2238_s24, 1024  ;;  %s1916_s11 = smov [#allocation9]  }
  0x9d   : > { %p1741_p1 = scmp.ne.s32.totalorder %s2238_s24, %s1740_s30  ;;  %s1745_s5 = sshll.u32 %s1916_s11, 4  ;;  %s1746_s5 = int_to_ptr.vmem [resolvable:$false] %s1745_s5 }
  0x9e   : > { %s1747_s19 = scalar_lea.vmem %s1746_s5, 2048  ;;  %p1748_p8 = scmp.lt.s32.totalorder %s2238_s24, %s1746_s5 }
  0x9f   : > { %p1743_p0 = pnand %p1741_p1, %p1727_p13  ;;  %p1749_p7 = scmp.lt.s32.totalorder %s1747_s19, %s1740_s30 }
  0xa1   : > { %p1744_p5 = pneg %p1743_p0  ;;  %p1750_p10 = por %p1749_p7, %p1748_p8 }
  0xa3   : > { %p1751_p4 = pnand %p1750_p10, %p1744_p5 }
  0xa5   : > { %1754 = shalt.err (!%p1751_p4)
}
  0xa6   : > { %s1917_s8 = smov 128   ;;  %s2504_s4 = smov 4  }
  0xa7   : > { %1446 = dma.hbm_to_vmem [thread:$0]  (!%p2234_p6), %s2220_s3, 1024, %s2238_s24, %s2240_s0, %s1917_s8, %s2496_s15, %s2504_s4  }
  0xa8   : > { %p2505_p13 = scmp.ne.s32.totalorder %s2490_s26, 0 }
  0xa9   : > { %s366_s25 = sand.u32 (!%p2505_p13), 1, %s1885_s12   ;;  %p2506_p9 = scmp.ne.s32.totalorder (!%p2505_p13), %s2484_s22, 0 }
  0xaa   : > { %364 = sbr.rel (%p2505_p13) target bundleno = 1118 (0x45e), region = 52  ;;  %s2273_s7 = sshll.u32 (!%p2505_p13), %s366_s25, 4 }
  0xab   : > { %s367_s1 = scalar_lea.sflag (!%p2505_p13), [#allocation4], %s366_s25  ;;  %s370_s14 = scalar_lea.vmem (!%p2505_p13), [#allocation3], %s2273_s7 }
  0xb1   : > { %1840 = dma.done.wait (%p2506_p9), %s367_s1, 256  }
  0xb2   : > { %1842 = vsyncadd (%p2506_p9), %s367_s1, 4294967040  ;;  %p2507_p12 = scmp.ne.s32.totalorder %s2483_s21, 0 }
  0xb4   : > { %1844 = dma.done.wait (%p2507_p12), [#allocation7], 2048  }
  0xb5   : > { %1846 = vsyncadd (%p2507_p12), [#allocation7], 4294965248  ;;  %s383_s3 = sand.u32 1, %s1873_s9   ;;  %p2508_p6 = scmp.ne.s32.totalorder %s2485_s23, 0 }
  0xb6   : > { %s1215_s26 = sshll.u32 %s383_s3, 6  ;;  %s384_s15 = scalar_lea.sflag [#allocation10], %s383_s3 }
  0xb7   : > { %s2285_s24 = scalar_lea.vmem [#allocation9], %s1215_s26 }
  0xb8   : > { %1848 = dma.done.wait (%p2508_p6), %s384_s15, 1024  }
  0xb9   : > { %1850 = vsyncadd (%p2508_p6), %s384_s15, 4294966272  ;;  %s2509_s22 = sld [smem:[#allocation18_spill]]  ;;  %s2510_s20 = sld [smem:[#allocation17_spill]] }
  0xba   : > { %s430_s0 = sand.u32 1, %s1861_s28   ;;  %s2511_s23 = sld [smem:[#allocation25_spill]] }
  0xbb   : > { %s1216_s30 = sshll.u32 %s430_s0, 4  ;;  %s2512_s3 = sld [smem:[#allocation30_spill]] }
  0xbc   : > { %s2306_s15 = scalar_lea.vmem [#allocation11], %s1216_s30 }
  0xbf   : > { %s1217_s21 = sshll.u32 %s2509_s22, 2  ;;  %p440_p2 = scmp.lt.s32.totalorder %s2510_s20, 1 }
  0xc0   : > { %p435_p3 = scmp.lt.s32.totalorder %s1217_s21, 7  ;;  %p1219_p11 = scmp.ne.s32.totalorder %s2510_s20, 0 }
  0xc1   : > { %s2297_s11 = scalar_select %p440_p2, %s2510_s20, 1 }
  0xc2   : > { %s2548_s21 = smov (!%p435_p3, %s1217_s21), 7  ;;  %448 = sbr.rel (%p1219_p11) target bundleno = 833 (0x341), region = 72 }
  0xc3   : > { %s1218_s5 = sshll.u32 %s2548_s21, 3  ;;  %s442_s26 = scalar_lea.vmem %s2512_s3, %s2297_s11  ;;  %v1918_v2 = vmov (!%p1219_p11), 0   ;;  %v1589_v13 = vld [vmem:[#allocation6] sm:$0xff] (!%p1219_p11)   ;;  %v1600_v15 = vld [vmem:[#allocation8 + $0x8] sm:$0xff] (!%p1219_p11)   ;;  %v1601_v16 = vld [vmem:[#allocation8 + $0x10] sm:$0xff] (!%p1219_p11)   ;;  %v449_v18 = vlaneseq (!%p1219_p11) }
  0xc4   : > { %s438_s4 = scalar_lea.vmem %s2511_s23, %s1218_s5  ;;  %1580 = vset.pattern.permute.xlu1 (!%p1219_p11), %v1918_v2  ;;  %1579 = vset.pattern.permute.xlu0 (!%p1219_p11), %v1918_v2  ;;  %s2513_s5 = sld [smem:[#allocation26_spill]] (!%p1219_p11)  ;;  %v1599_v14 = vld [vmem:[#allocation8] sm:$0xff] (!%p1219_p11)   ;;  %v1602_v17 = vld [vmem:[#allocation8 + $0x18] sm:$0xff] (!%p1219_p11)   ;;  %v1590_v25 = vld [vmem:[#allocation6 + $0x8] sm:$0xff] (!%p1219_p11)   ;;  %v1919_v26 = vmov (!%p1219_p11), 1.0|1.0  }
  0xc5   : > { %v453_v0 = vld [vmem:[%s438_s4 + $0x10] sm:$0xff] (!%p1219_p11)  ;;  %v451_v1 = vld [vmem:[%s438_s4] sm:$0xff] (!%p1219_p11)  ;;  %v454_v3 = vld [vmem:[%s438_s4 + $0x18] sm:$0xff] (!%p1219_p11)  ;;  %1375 = vmatprep.subr.bf16.mxu1 (!%p1219_p11), %v1599_v14  ;;  %v450_v21 = vand.u32 (!%p1219_p11), 127, %v449_v18  ;;  %s2514_s30 = sld [smem:[#allocation29_spill]] (!%p1219_p11) }
  0xc6   : > { %v452_v4 = vld [vmem:[%s438_s4 + $0x8] sm:$0xff] (!%p1219_p11)  ;;  %462 = vperm.xlu1 (!%p1219_p11), %1580, %v453_v0   ;;  %456 = vperm.xlu0 (!%p1219_p11), %1579, %v451_v1   ;;  %v1597_v24 = vld [vmem:[%s370_s14] sm:$0xff] (!%p1219_p11)   ;;  %v1594_v30 = vld [vmem:[#allocation6 + $0x28] sm:$0xff] (!%p1219_p11)  }
  0xc7   : > { %1376 = vmatpush3.bf16.msra.mxu1 (!%p1219_p11), %v1599_v14  ;;  %v1591_v27 = vld [vmem:[#allocation6 + $0x10] sm:$0xff] (!%p1219_p11)   ;;  %v1592_v28 = vld [vmem:[#allocation6 + $0x18] sm:$0xff] (!%p1219_p11)   ;;  %v1593_v29 = vld [vmem:[#allocation6 + $0x20] sm:$0xff] (!%p1219_p11)  }
  0xc8   : > { %1377 = vmatprep.subr.bf16.mxu1 (!%p1219_p11), %v1600_v15  ;;  %v1595_v31 = vld [vmem:[#allocation6 + $0x30] sm:$0xff] (!%p1219_p11)   ;;  %v1596_v32 = vld [vmem:[#allocation6 + $0x38] sm:$0xff] (!%p1219_p11)   ;;  %v1603_v34 = vld [vmem:[#allocation8 + $0x20] sm:$0xff] (!%p1219_p11)  }
  0xc9   : > { %v1598_v33 = vld [vmem:[%s370_s14 + $0x8] sm:$0xff]   ;;  %v1605_v36 = vld [vmem:[#allocation8 + $0x30] sm:$0xff]  }
  0xca   : > { %v1581_v5 = vld [vmem:[%s2513_s5] sm:$0xff]   ;;  %v1582_v6 = vld [vmem:[%s2513_s5 + $0x8] sm:$0xff]   ;;  %465 = vperm.xlu1 %1580, %v454_v3   ;;  %459 = vperm.xlu0 %1579, %v452_v4   ;;  %v1583_v7 = vld [vmem:[%s2513_s5 + $0x10] sm:$0xff]  }
  0xcb   : > { %1335 = vmatprep.subr.bf16.mxu0 %v1581_v5  ;;  %v1584_v8 = vld [vmem:[%s2513_s5 + $0x18] sm:$0xff]   ;;  %v1585_v9 = vld [vmem:[%s2513_s5 + $0x20] sm:$0xff]   ;;  %v1586_v10 = vld [vmem:[%s2513_s5 + $0x28] sm:$0xff]   ;;  %1378 = vmatpush3.bf16.msra.mxu1 %v1600_v15 }
  0xcc   : > { %1336 = vmatpush3.bf16.msra.mxu0 %v1581_v5  ;;  %v1587_v11 = vld [vmem:[%s2513_s5 + $0x30] sm:$0xff]   ;;  %v1588_v12 = vld [vmem:[%s2513_s5 + $0x38] sm:$0xff]   ;;  %1379 = vmatprep.subr.bf16.mxu1 %v1601_v16  ;;  %v1606_v37 = vld [vmem:[#allocation8 + $0x38] sm:$0xff]  }
  0xcd   : > { %1337 = vmatprep.subr.bf16.mxu0 %v1582_v6  ;;  %v1604_v35 = vld [vmem:[#allocation8 + $0x28] sm:$0xff]   ;;  %v1246_v48 = vld [vmem:[%s2514_s30] ss:$0 sm:$0xff] }
  0xcf   : > { %1380 = vmatpush3.bf16.msra.mxu1 %v1601_v16 }
  0xd0   : > { %1338 = vmatpush3.bf16.msra.mxu0 %v1582_v6  ;;  %1381 = vmatprep.subr.bf16.mxu1 %v1602_v17 }
  0xd1   : > { %1339 = vmatprep.subr.bf16.mxu0 %v1583_v7 }
  0xd3   : > { %1382 = vmatpush3.bf16.msra.mxu1 %v1602_v17 }
  0xd4   : > { %1340 = vmatpush3.bf16.msra.mxu0 %v1583_v7  ;;  %1383 = vmatprep.subr.bf16.mxu1 %v1603_v34 }
  0xd5   : > { %1341 = vmatprep.subr.bf16.mxu0 %v1584_v8 }
  0xd7   : > { %1384 = vmatpush3.bf16.msra.mxu1 %v1603_v34 }
  0xd8   : > { %1342 = vmatpush3.bf16.msra.mxu0 %v1584_v8  ;;  %1385 = vmatprep.subr.bf16.mxu1 %v1604_v35 }
  0xd9   : > { %1343 = vmatprep.subr.bf16.mxu0 %v1585_v9 }
  0xdb   : > { %1386 = vmatpush3.bf16.msra.mxu1 %v1604_v35 }
  0xdc   : > { %1344 = vmatpush3.bf16.msra.mxu0 %v1585_v9  ;;  %1387 = vmatprep.subr.bf16.mxu1 %v1605_v36 }
  0xdd   : > { %1345 = vmatprep.subr.bf16.mxu0 %v1586_v10 }
  0xdf   : > { %1388 = vmatpush3.bf16.msra.mxu1 %v1605_v36 }
  0xe0   : > { %1346 = vmatpush3.bf16.msra.mxu0 %v1586_v10  ;;  %1389 = vmatprep.subr.bf16.mxu1 %v1606_v37 }
  0xe1   : > { %1347 = vmatprep.subr.bf16.mxu0 %v1587_v11 }
  0xe3   : > { %1390 = vmatpush3.bf16.msra.mxu1 %v1606_v37 }
  0xe4   : > { %1348 = vmatpush3.bf16.msra.mxu0 %v1587_v11 }
  0xe5   : > { %1349 = vmatprep.subr.bf16.mxu0 %v1588_v12 }
  0xe8   : > { %1350 = vmatpush3.bf16.msra.mxu0 %v1588_v12 }
  0xe9   : > { %1355 = vmatprep.subr.bf16.mxu0 %v1589_v13 }
 0x145   : > { %v463_v19 = vpop.permute.xlu1 %462  ;;  %v457_v20 = vpop.permute.xlu0 %456 }
 0x146   : > { %vm469_vm0 = vcmp.eq.s32.totalorder %v463_v19, %v450_v21  ;;  %vm467_vm3 = vcmp.eq.s32.totalorder %v457_v20, %v450_v21 }
 0x149   : > { %v466_v22 = vpop.permute.xlu1 %465  ;;  %v460_v23 = vpop.permute.xlu0 %459 }
 0x14a   : > { %vm470_vm1 = vcmp.eq.s32.totalorder %v466_v22, %v450_v21  ;;  %vm468_vm2 = vcmp.eq.s32.totalorder %v460_v23, %v450_v21 }
 0x14b   : > { %vm1234_vm4 = vmpackc.low %vm470_vm1, %vm469_vm0 }
 0x14c   : > { %vm1232_vm5 = vmpackc.low %vm468_vm2, %vm467_vm3 }
 0x14d   : > { %1351 = vmatprep.mubr.msk.bf16.mxu0 %vm1232_vm5, %v1919_v26 }
 0x14e   : > { %1352 = vmatmul.mubr.msk.bf16.vlgmr.msra.gmra.mrb[0].mxu0 %vm1234_vm4, %v1919_v26 }
 0x14f   : > { %1356 = vmatpush3.bf16.msra.mxu0 %v1589_v13  ;;  %1371 = vmatprep.mubr.bf16.mxu0 %v1597_v24 }
 0x150   : > { %1357 = vmatprep.subr.bf16.mxu0 %v1590_v25 }
 0x153   : > { %1358 = vmatpush3.bf16.msra.mxu0 %v1590_v25 }
 0x154   : > { %1359 = vmatprep.subr.bf16.mxu0 %v1591_v27 }
 0x157   : > { %1360 = vmatpush3.bf16.msra.mxu0 %v1591_v27 }
 0x158   : > { %1361 = vmatprep.subr.bf16.mxu0 %v1592_v28 }
 0x15b   : > { %1362 = vmatpush3.bf16.msra.mxu0 %v1592_v28 }
 0x15c   : > { %1363 = vmatprep.subr.bf16.mxu0 %v1593_v29 }
 0x15f   : > { %1364 = vmatpush3.bf16.msra.mxu0 %v1593_v29 }
 0x160   : > { %1365 = vmatprep.subr.bf16.mxu0 %v1594_v30 }
 0x163   : > { %1366 = vmatpush3.bf16.msra.mxu0 %v1594_v30 }
 0x164   : > { %1367 = vmatprep.subr.bf16.mxu0 %v1595_v31 }
 0x167   : > { %1368 = vmatpush3.bf16.msra.mxu0 %v1595_v31 }
 0x168   : > { %1369 = vmatprep.subr.bf16.mxu0 %v1596_v32 }
 0x16b   : > { %1370 = vmatpush3.bf16.msra.mxu0 %v1596_v32 }
 0x16e   : > { %1372 = vmatmul.mubr.bf16.vlgmr.msra.gmra.mrb[0].mxu0 %v1598_v33 }
 0x241   : > { %v1373_v38 = vpop.f32.mrb[0].mxu0 }
 0x242   : > { %1607 = vtanh.f32 %v1373_v38  ;;  %v708_v39 = vpop.f32.mrb[1].mxu0 }
 0x243   : > { %1609 = vtanh.f32 %v708_v39  ;;  %v1374_v40 = vpop.f32.mrb[2].mxu0 }
 0x244   : > { %1611 = vtanh.f32 %v1374_v40  ;;  %v711_v41 = vpop.f32.mrb[3].mxu0 }
 0x245   : > { %1613 = vtanh.f32 %v711_v41 }
 0x24c   : > { %v1608_v42 = vpop.eup %1607 }
 0x24d   : > { %v1610_v43 = vpop.eup %1609 }
 0x24e   : > { %v1612_v44 = vpop.eup %1611 }
 0x24f   : > { %v1614_v45 = vpop.eup %1613  ;;  %v728_v46 = vpack.c.bf16 %v1612_v44, %v1608_v42 }
 0x250   : > { %v727_v47 = vpack.c.bf16 %v1614_v45, %v1610_v43 }
 0x252   : > { %1391 = vmatprep.mubr.bf16.mxu1 %v727_v47 }
 0x253   : > { %1392 = vmatmul.mubr.bf16.vlgmr.msra.gmra.mrb[0].mxu1 %v728_v46 }
 0x326   : > { %v1393_v49 = vpop.f32.mrb[0].mxu1 }
 0x327   : > { %v843_v50 = vadd.f32 %v1393_v49, %v1246_v48  ;;  %v834_v51 = vpop.f32.mrb[1].mxu1 }
 0x328   : > { %v835_v52 = vadd.f32 %v1246_v48, %v834_v51  ;;  %v1394_v53 = vpop.f32.mrb[2].mxu1 }
 0x329   : > { %v855_v54 = vmin.f32 %v843_v50, 0.0  ;;  %v846_v55 = vadd.f32 %v1394_v53, %v1246_v48  ;;  %v837_v56 = vpop.f32.mrb[3].mxu1  ;;  %vm851_vm6 = vcmp.gt.f32.partialorder %v843_v50, 0.0 }
 0x32a   : > { %v853_v57 = vmin.f32 %v835_v52, 0.0  ;;  %v838_v58 = vadd.f32 %v1246_v48, %v837_v56  ;;  %vm849_vm8 = vcmp.gt.f32.partialorder %v835_v52, 0.0 }
 0x32b   : > { %v861_v59 = vmul.f32 1.442695, %v855_v54  ;;  %v856_v60 = vmin.f32 %v846_v55, 0.0  ;;  %vm852_vm7 = vcmp.gt.f32.partialorder %v846_v55, 0.0 }
 0x32c   : > { %v857_v61 = vmul.f32 1.442695, %v853_v57  ;;  %v854_v62 = vmin.f32 %v838_v58, 0.0  ;;  %vm850_vm9 = vcmp.gt.f32.partialorder %v838_v58, 0.0 }
 0x32d   : > { %1615 = vpow2.f32 %v861_v59  ;;  %v863_v63 = vmul.f32 1.442695, %v856_v60 }
 0x32e   : > { %1617 = vpow2.f32 %v857_v61  ;;  %v859_v0 = vmul.f32 1.442695, %v854_v62 }
 0x32f   : > { %1619 = vpow2.f32 %v863_v63 }
 0x330   : > { %1621 = vpow2.f32 %v859_v0 }
 0x337   : > { %v1616_v1 = vpop.eup %1615 }
 0x338   : > { %v1618_v2 = vpop.eup %1617  ;;  %v1257_v3 = vadd.f32 -1.0, %v1616_v1 }
 0x339   : > { %v1620_v4 = vpop.eup %1619  ;;  %v1255_v5 = vadd.f32 -1.0, %v1618_v2 }
 0x33a   : > { %v1622_v6 = vpop.eup %1621  ;;  %v1258_v7 = vadd.f32 -1.0, %v1620_v4  ;;  %v871_v9 = vsel %vm851_vm6, %v843_v50, %v1257_v3 }
 0x33b   : > { %v1256_v8 = vadd.f32 -1.0, %v1622_v6  ;;  %v869_v11 = vsel %vm849_vm8, %v835_v52, %v1255_v5 }
 0x33c   : > { %v872_v10 = vsel %vm852_vm7, %v846_v55, %v1258_v7 }
 0x33d   : > { %v874_v12 = vpack.c.bf16 %v872_v10, %v871_v9  ;;  %v870_v13 = vsel %vm850_vm9, %v838_v58, %v1256_v8 }
 0x33e   : > { %v873_v14 = vpack.c.bf16 %v870_v13, %v869_v11 }
 0x33f   : > { %876 = vst [vmem:[#allocation2 + $0x8] sm:$0xff] %v874_v12 }
 0x340   : > { %875 = vst [vmem:[#allocation2] sm:$0xff] %v873_v14 }
 0x341 PF: > { %v1623_v15 = vld [vmem:[%s2285_s24] sm:$0xff]   ;;  %v1624_v16 = vld [vmem:[%s2285_s24 + $0x8] sm:$0xff]   ;;  %v1625_v17 = vld [vmem:[%s2285_s24 + $0x10] sm:$0xff]   ;;  %s2516_s1 = sld [smem:[#allocation18_spill]]  ;;  %s2517_s3 = sld [smem:[#allocation17_spill]] }
 0x342   : > { %1395 = vmatprep.subr.bf16.mxu0 %v1623_v15  ;;  %v1626_v18 = vld [vmem:[%s2285_s24 + $0x18] sm:$0xff]   ;;  %v1627_v20 = vld [vmem:[%s2285_s24 + $0x20] sm:$0xff]   ;;  %v1628_v21 = vld [vmem:[%s2285_s24 + $0x28] sm:$0xff]   ;;  %s2518_s22 = sld [smem:[#allocation20_spill]]  ;;  %s1051_s21 = sshll.u32 %s2306_s15, 4  ;;  %s2361_s21 = int_to_ptr.vmem [resolvable:$true] %s1051_s21 }
 0x343   : > { %1396 = vmatpush3.bf16.msra.mxu0 %v1623_v15  ;;  %v1629_v22 = vld [vmem:[%s2285_s24 + $0x30] sm:$0xff]   ;;  %v1630_v23 = vld [vmem:[%s2285_s24 + $0x38] sm:$0xff]   ;;  %s2519_s20 = sld [smem:[#allocation31_spill]]  ;;  %s2367_s14 = scalar_lea.sflag [#allocation5], %s430_s0 }
 0x344   : > { %1397 = vmatprep.subr.bf16.mxu0 %v1624_v16  ;;  %v1259_v25 = vld [vmem:[%s442_s26] ss:$0 sm:$0xff]  ;;  %s1755_s30 = scalar_lea.vmem %s2361_s21, 256  ;;  %s1920_s23 = smov [#allocation11]  }
 0x345   : > { %p1756_p1 = scmp.ne.s32.totalorder %s2361_s21, %s1755_s30  ;;  %s1759_s4 = sshll.u32 %s1920_s23, 4  ;;  %s1760_s4 = int_to_ptr.vmem [resolvable:$false] %s1759_s4 }
 0x346   : > { %v878_v24 = vld [vmem:[#allocation2 + $0x8] sm:$0xff]  ;;  %s1761_s25 = scalar_lea.vmem %s1760_s4, 512  ;;  %p1762_p7 = scmp.lt.s32.totalorder %s2361_s21, %s1760_s4 }
 0x347   : > { %1398 = vmatpush3.bf16.msra.mxu0 %v1624_v16  ;;  %v877_v19 = vld [vmem:[#allocation2] sm:$0xff]  ;;  %s1283_s24 = sshll.u32 %s2516_s1, 3  ;;  %p1763_p10 = scmp.lt.s32.totalorder %s1761_s25, %s1755_s30 }
 0x348   : > { %1399 = vmatprep.subr.bf16.mxu0 %v1625_v17  ;;  %1411 = vmatprep.mubr.bf16.mxu0 %v877_v19  ;;  %s1048_s11 = sadd.s32 %s2517_s3, %s1283_s24  ;;  %p2520_p0 = scmp.ne.s32.totalorder %s2518_s22, 0 }
 0x349   : > { %s1275_s26 = sshll.u32 %s1048_s11, 6  ;;  %p1764_p4 = por %p1763_p10, %p1762_p7 }
 0x34a   : > { %s2359_s7 = scalar_lea.hbm %s2519_s20, %s1275_s26  ;;  %p1757_p5 = pnand %p1756_p1, %p2520_p0 }
 0x34b   : > { %1400 = vmatpush3.bf16.msra.mxu0 %v1625_v17 }
 0x34c   : > { %1401 = vmatprep.subr.bf16.mxu0 %v1626_v18  ;;  %p1758_p8 = pneg %p1757_p5 }
 0x34e   : > { %p1765_p13 = pnand %p1764_p4, %p1758_p8 }
 0x34f   : > { %1402 = vmatpush3.bf16.msra.mxu0 %v1626_v18 }
 0x350   : > { %1403 = vmatprep.subr.bf16.mxu0 %v1627_v20 }
 0x353   : > { %1404 = vmatpush3.bf16.msra.mxu0 %v1627_v20 }
 0x354   : > { %1405 = vmatprep.subr.bf16.mxu0 %v1628_v21 }
 0x357   : > { %1406 = vmatpush3.bf16.msra.mxu0 %v1628_v21 }
 0x358   : > { %1407 = vmatprep.subr.bf16.mxu0 %v1629_v22 }
 0x35b   : > { %1408 = vmatpush3.bf16.msra.mxu0 %v1629_v22 }
 0x35c   : > { %1409 = vmatprep.subr.bf16.mxu0 %v1630_v23 }
 0x35f   : > { %1410 = vmatpush3.bf16.msra.mxu0 %v1630_v23 }
 0x362   : > { %1412 = vmatmul.mubr.bf16.vlgmr.msra.gmra.mrb[0].mxu0 %v878_v24 }
 0x435   : > { %v1413_v26 = vpop.f32.mrb[0].mxu0 }
 0x436   : > { %v993_v27 = vadd.f32 %v1413_v26, %v1259_v25  ;;  %v984_v28 = vpop.f32.mrb[1].mxu0 }
 0x437   : > { %v985_v29 = vadd.f32 %v1259_v25, %v984_v28  ;;  %v1414_v30 = vpop.f32.mrb[2].mxu0 }
 0x438   : > { %v1001_v31 = vmul.f32 0.5, %v993_v27  ;;  %v996_v32 = vadd.f32 %v1414_v30, %v1259_v25  ;;  %v987_v33 = vpop.f32.mrb[3].mxu0 }
 0x439   : > { %v999_v34 = vmul.f32 0.5, %v985_v29  ;;  %v988_v35 = vadd.f32 %v1259_v25, %v987_v33 }
 0x43a   : > { %1631 = vtanh.f32 %v1001_v31  ;;  %v1002_v36 = vmul.f32 0.5, %v996_v32 }
 0x43b   : > { %1633 = vtanh.f32 %v999_v34  ;;  %v1000_v37 = vmul.f32 0.5, %v988_v35 }
 0x43c   : > { %1635 = vtanh.f32 %v1002_v36 }
 0x43d   : > { %1637 = vtanh.f32 %v1000_v37 }
 0x444   : > { %v1632_v38 = vpop.eup %1631 }
 0x445   : > { %v1634_v39 = vpop.eup %1633  ;;  %v1009_v40 = vmul.f32 0.5, %v1632_v38 }
 0x446   : > { %v1636_v41 = vpop.eup %1635  ;;  %v1007_v42 = vmul.f32 0.5, %v1634_v39 }
 0x447   : > { %v1638_v43 = vpop.eup %1637  ;;  %v1010_v44 = vmul.f32 0.5, %v1636_v41  ;;  %v1013_v46 = vadd.f32 0.5, %v1009_v40 }
 0x448   : > { %v1008_v45 = vmul.f32 0.5, %v1638_v43  ;;  %v1011_v48 = vadd.f32 0.5, %v1007_v42 }
 0x449   : > { %v1014_v47 = vadd.f32 0.5, %v1010_v44 }
 0x44a   : > { %v1012_v49 = vadd.f32 0.5, %v1008_v45 }
 0x44b   : > { %v1292_v50 = vpack.c.bf16 %v1014_v47, %v1013_v46 }
 0x44c   : > { %v1287_v51 = vpack.c.bf16 %v1012_v49, %v1011_v48 }
 0x44d   : > { %1294 = vst [vmem:[%s2306_s15 + $0x8] sm:$0xff] %v1292_v50  }
 0x44e   : > { %1288 = vst [vmem:[%s2306_s15] sm:$0xff] %v1287_v51  }
 0x44f   : > { %1768 = shalt.err (!%p1765_p13)
}
 0x450   : > { %s1769_s0 = scalar_lea.hbm %s2359_s7, 256  ;;  %s1773_s3 = scalar_lea.hbm %s2519_s20, 1024 }
 0x451   : > { %p1770_p9 = scmp.ne.s32.totalorder %s2359_s7, %s1769_s0  ;;  %p1774_p3 = scmp.lt.u32.totalorder %s2359_s7, %s2519_s20 }
 0x452   : > { %p1775_p2 = scmp.lt.u32.totalorder %s1773_s3, %s1769_s0  ;;  %p1777_p1 = scmp.lt.u32.totalorder %s1769_s0, %s2359_s7 }
 0x453   : > { %p1771_p12 = pnand %p1770_p9, %p2520_p0 }
 0x454   : > { %p1776_p11 = por %p1775_p2, %p1774_p3 }
 0x455   : > { %p1772_p6 = pneg %p1771_p12 }
 0x456   : > { %p1778_p5 = por %p1777_p1, %p1776_p11 }
 0x458   : > { %p1779_p8 = pnand %p1778_p5, %p1772_p6 }
 0x45a   : > { %1782 = shalt.err (!%p1779_p8)
}
 0x45b   : > { %s1921_s26 = smov 64   ;;  %s1922_s19 = smov 128  }
 0x45c   : > { %s1923_s8 = smov 4  }
 0x45d   : > { %1431 = dma.vmem_to_hbm [thread:$0]  (%p2520_p0), %s2361_s21, 256, %s2359_s7, %s2367_s14, %s1921_s26, %s1922_s19, %s1923_s8  }
 0x45e PF: > { %s2521_s30 = sld [smem:[#allocation16_spill]]  ;;  %s2522_s23 = sld [smem:[#allocation21_spill]] }
 0x45f   : > { %p1456_p7 = scmp.ge.s32.totalorder %s1909_s18, 2 }
 0x464   : > { %s1066_s4 = sand.u32 1, %s2521_s30   ;;  %p2523_p10 = scmp.ne.s32.totalorder %s2522_s23, 0 }
 0x465   : > { %s1067_s25 = scalar_lea.sflag [#allocation5], %s1066_s4 }
 0x466   : > { %p1448_p4 = pnand %p1456_p7, %p2523_p10 }
 0x468   : > { %1852 = dma.done.wait (!%p1448_p4), %s1067_s25, 256  }
 0x469   : > { %1854 = vsyncadd (!%p1448_p4), %s1067_s25, 4294967040  ;;  %s28_s18 = sadd.s32 1, %s1909_s18   ;;  %s2525_s22 = sld [smem:[#allocation23_spill]] }
 0x46a   : > { %p2396_p13 = scmp.ge.s32.totalorder %s28_s18, 6   ;;  %s2526_s21 = smov %s2225_s27 }
 0x46b   : > { %s2527_s14 = sld [smem:[#allocation19_spill]]  ;;  %s2528_s7 = sld [smem:[#allocation22_spill]] }
 0x46c   : > { %s2529_s27 = smov %s1861_s28  ;;  %s2530_s28 = smov %s1865_s29 }
 0x46d   : > { %s2531_s29 = smov %s2228_s16  ;;  %s2532_s30 = smov %s1873_s9 }
 0x46e   : > { %s2533_s9 = smov %s1877_s10  ;;  %s2535_s11 = smov %s1885_s12 }
 0x46f   : > { %s2534_s10 = smov %s2525_s22  ;;  %s2536_s12 = smov %s1889_s13 }
 0x470   : > { %s2537_s13 = smov %s2526_s21  ;;  %s2538_s15 = smov %s1905_s17 }
 0x471   : > { %s2539_s16 = smov %s2528_s7  ;;  %s2540_s17 = smov %s2546_s2 }
 0x472   :  { %27 = sbr.rel (!%p2396_p13) target bundleno = 22 (0x16), region = 128 }
 0x479   :  { %1072 = vsyncpa [#allocation4], 1 }
 0x47a   :  { %1074 = vsyncpa [#allocation4 + $0x1], 1 }
 0x47b   :  { %1075 = vsyncpa [#allocation7], 1 }
 0x47c   :  { %1076 = vsyncpa [#allocation10], 1 }
 0x47d   :  { %1078 = vsyncpa [#allocation10 + $0x1], 1 }
 0x47e   :  { %1079 = vsyncpa [#allocation5], 1 }
 0x47f   :  { %1081 = vsyncpa [#allocation5 + $0x1], 1 }

</bundles_post_ra>
